<compile_context>
chip_gen: v6e
topology: v6e:2x2x1
jax: 0.10.0
libtpu: 0.0.40
codegen_flags: <defaults>
</compile_context>

<pallas_src>
import functools

import jax
import jax.numpy as jnp
from jax.experimental import pallas as pl
from jax.experimental.pallas import tpu as pltpu


def _round_up(x, m):
    return ((x + m - 1) // m) * m


def _patch_embed_kernel(x_ref, w_ref, b_ref, o_ref):
    # x_ref: (tm, K) bf16 patches; w_ref: (K, Npad) bf16; b_ref: (1, Npad) f32
    acc = jnp.dot(x_ref[...], w_ref[...], preferred_element_type=jnp.float32)
    o_ref[...] = (acc + b_ref[...]).astype(o_ref.dtype)


def patch_embed(x, weight, bias, patch_size, *, compute_dtype=jnp.bfloat16,
                block_m=512):
    """x: (B, C, H, W); weight: (n_embed, C, p, p); bias: (n_embed,).

    Returns (B, num_patches, n_embed), same semantics as PatchEmbed.forward.
    """
    B, C, H, W = x.shape
    p = patch_size
    n_embed = weight.shape[0]
    Hp, Wp = H // p, W // p
    num_patches = Hp * Wp
    M = B * num_patches
    K = C * p * p

    # --- patchify: (c, ph, pw) fastest-varying to match Conv2d OIHW weights ---
    patches = x.reshape(B, C, Hp, p, Wp, p)
    patches = patches.transpose(0, 2, 4, 1, 3, 5).reshape(M, K)

    # Lane-dense output: pad n_embed up to a multiple of 128.
    Npad = _round_up(n_embed, 128)
    # Row tile: block_m rows for realistic shapes, whole (8-aligned) M for tiny.
    tm = block_m if M >= block_m else _round_up(M, 8)
    Mpad = _round_up(M, tm)

    # Cast before padding so the padded rows are materialized only in bf16.
    patches = patches.astype(compute_dtype)
    if Mpad != M:
        patches = jnp.pad(patches, ((0, Mpad - M), (0, 0)))

    w2d = weight.reshape(n_embed, K).T.astype(compute_dtype)      # (K, n_embed)
    b2d = bias.astype(jnp.float32).reshape(1, n_embed)            # (1, n_embed)
    if Npad != n_embed:
        w2d = jnp.pad(w2d, ((0, 0), (0, Npad - n_embed)))
        b2d = jnp.pad(b2d, ((0, 0), (0, Npad - n_embed)))

    grid = (Mpad // tm,)

    bytes_accessed = (
        Mpad * K * patches.dtype.itemsize          # patch rows in
        + K * Npad * w2d.dtype.itemsize            # weight (resident)
        + Npad * b2d.dtype.itemsize                # bias
        + Mpad * Npad * x.dtype.itemsize           # output rows
    )

    out = pl.pallas_call(
        _patch_embed_kernel,
        out_shape=jax.ShapeDtypeStruct((Mpad, Npad), x.dtype),
        grid_spec=pltpu.PrefetchScalarGridSpec(
            num_scalar_prefetch=0,
            grid=grid,
            in_specs=[
                # patches: streamed over M (double-buffered by Pallas)
                pl.BlockSpec((tm, K), lambda i: (i, 0)),
                # weight: resident across the whole grid
                pl.BlockSpec((K, Npad), lambda i: (0, 0)),
                # bias: resident
                pl.BlockSpec((1, Npad), lambda i: (0, 0)),
            ],
            out_specs=pl.BlockSpec((tm, Npad), lambda i: (i, 0)),
        ),
        compiler_params=pltpu.CompilerParams(
            dimension_semantics=("parallel",),
            vmem_limit_bytes=32 * 1024 * 1024,
            allow_input_fusion=[0],
        ),
        cost_estimate=pl.CostEstimate(
            flops=2 * Mpad * K * Npad,
            transcendentals=0,
            bytes_accessed=bytes_accessed,
        ),
    )(patches, w2d, b2d)

    out = out[:M, :n_embed]
    return out.reshape(B, num_patches, n_embed)


if __name__ == "__main__":
    # Small shapes consistent with the module's forward.
    B, C, H, W = 2, 4, 16, 16
    patch_size = 8
    n_embed = 32
    num_patches = (H * W) // (patch_size ** 2)  # 4

    key = jax.random.PRNGKey(0)
    kx, kw, kb = jax.random.split(key, 3)

    x = jax.random.normal(kx, (B, C, H, W), dtype=jnp.float32)
    # Conv2d-shaped parameters: weight (O, C, p, p), bias (O,)
    fan_in = C * patch_size * patch_size
    bound = 1.0 / (fan_in ** 0.5)
    weight = jax.random.uniform(
        kw, (n_embed, C, patch_size, patch_size), jnp.float32, -bound, bound
    )
    bias = jax.random.uniform(kb, (n_embed,), jnp.float32, -bound, bound)

    patch_embed_jit = jax.jit(
        functools.partial(patch_embed, patch_size=patch_size)
    )
    out = patch_embed_jit(x, weight, bias)
    out = jax.block_until_ready(out)

    # Reference in plain JAX (f32 conv, the original module's math).
    ref = jax.lax.conv_general_dilated(
        x, weight, window_strides=(patch_size, patch_size), padding="VALID",
        dimension_numbers=("NCHW", "OIHW", "NCHW"),
    ) + bias[None, :, None, None]
    ref = ref.reshape(B, n_embed, num_patches).transpose(0, 2, 1)

    assert out.shape == (B, num_patches, n_embed), out.shape
    # Tolerance accounts for bf16 MXU inputs (f32 accumulation).
    assert jnp.allclose(out, ref, atol=5e-2, rtol=5e-2), (
        float(jnp.max(jnp.abs(out - ref)))
    )

    print("KERNEL_OK")
</pallas_src>

<mosaic_0001>
module attributes {stable_mosaic.version = 11 : i64} {
  func.func @_patch_embed_kernel(%arg0: i32, %arg1: memref<8x256xbf16, #tpu.memory_space<vmem>>, %arg2: memref<256x128xbf16, #tpu.memory_space<vmem>>, %arg3: memref<1x128xf32, #tpu.memory_space<vmem>>, %arg4: memref<8x128xf32, #tpu.memory_space<vmem>>) attributes {dimension_semantics = [#tpu.dimension_semantics<parallel>], iteration_bounds = array<i64: 1>, scalar_prefetch = 0 : i64, scratch_operands = 0 : i64, tpu.core_type = #tpu.core_type<tc>, window_params = [{transform_indices = @transform_0, window_bounds = array<i64: 8, 256>}, {pipeline_mode = #tpu.pipeline_mode<synchronous>, transform_indices = @transform_1, window_bounds = array<i64: 256, 128>}, {pipeline_mode = #tpu.pipeline_mode<synchronous>, transform_indices = @transform_2, window_bounds = array<i64: 1, 128>}, {transform_indices = @transform_3, window_bounds = array<i64: 8, 128>}]} {
    %c0 = arith.constant 0 : index
    %c0_0 = arith.constant 0 : index
    %0 = vector.load %arg1[%c0, %c0_0] : memref<8x256xbf16, #tpu.memory_space<vmem>>, vector<8x256xbf16>
    %c0_1 = arith.constant 0 : index
    %c0_2 = arith.constant 0 : index
    %1 = vector.load %arg2[%c0_1, %c0_2] : memref<256x128xbf16, #tpu.memory_space<vmem>>, vector<256x128xbf16>
    %cst = arith.constant dense<0.000000e+00> : vector<8x128xf32>
    %2 = tpu.matmul %0, %1, %cst {dimension_numbers = #tpu.dot_dimension_numbers<[1], [0], [0], [1], [0, 0, 1, 1], [], []>} : vector<8x256xbf16>, vector<256x128xbf16>, vector<8x128xf32> -> vector<8x128xf32>
    %c0_3 = arith.constant 0 : index
    %c0_4 = arith.constant 0 : index
    %3 = vector.load %arg3[%c0_3, %c0_4] : memref<1x128xf32, #tpu.memory_space<vmem>>, vector<1x128xf32>
    %4 = vector.broadcast %3 : vector<1x128xf32> to vector<8x128xf32>
    %5 = arith.addf %2, %4 : vector<8x128xf32>
    %c0_5 = arith.constant 0 : index
    %c0_6 = arith.constant 0 : index
    %6 = vector.load %arg4[%c0_5, %c0_6] : memref<8x128xf32, #tpu.memory_space<vmem>>, vector<8x128xf32>
    tpu.vector_store %arg4[%c0_5, %c0_6], %5 {strides = array<i32>} : memref<8x128xf32, #tpu.memory_space<vmem>>, vector<8x128xf32>,
    return
  }
  func.func @transform_0(%arg0: i32) -> (i32, i32) {
    %c0_i32 = arith.constant 0 : i32
    %c0_i32_0 = arith.constant 0 : i32
    return %arg0, %c0_i32 : i32, i32
  }
  func.func @transform_1(%arg0: i32) -> (i32, i32) {
    %c0_i32 = arith.constant 0 : i32
    %c0_i32_0 = arith.constant 0 : i32
    %c0_i32_1 = arith.constant 0 : i32
    return %c0_i32, %c0_i32_0 : i32, i32
  }
  func.func @transform_2(%arg0: i32) -> (i32, i32) {
    %c0_i32 = arith.constant 0 : i32
    %c0_i32_0 = arith.constant 0 : i32
    %c0_i32_1 = arith.constant 0 : i32
    return %c0_i32, %c0_i32_0 : i32, i32
  }
  func.func @transform_3(%arg0: i32) -> (i32, i32) {
    %c0_i32 = arith.constant 0 : i32
    %c0_i32_0 = arith.constant 0 : i32
    return %arg0, %c0_i32 : i32, i32
  }
}

</mosaic_0001>

<bundles_post_ra>
// kernel: patch_embed.1
= control target key start
LH: loop header
LB: loop body
LE: loop exit
PB: predicated region body
PF: predicated region fallthrough
CT: control target
= control target key end

     0   :  { %s374_s0 = inlined_call_operand.vmem [shape: bf16[8,256], index: 0, kind: input, shape index: {}]   ;;  %s375_s1 = inlined_call_operand.vmem [shape: bf16[256,128], index: 1, kind: input, shape index: {}]   ;;  %s376_s2 = inlined_call_operand.vmem [shape: f32[1,128], index: 2, kind: input, shape index: {}]   ;;  %s377_s3 = inlined_call_operand.hbm [shape: f32[8,128], index: 3, kind: output, shape index: {}]  }
   0x1   :  { %v256_v0 = vld [vmem:[%s375_s1 + $0x78] sm:$0xff]   ;;  %v258_v2 = vld [vmem:[%s375_s1 + $0x70] sm:$0xff]   ;;  %v260_v4 = vld [vmem:[%s375_s1 + $0x68] sm:$0xff]  }
   0x2   :  { %v257_v1 = vld [vmem:[%s375_s1 + $0x38] sm:$0xff]   ;;  %233 = vmatprep.subr.bf16.mxu0 %v256_v0  ;;  %v259_v3 = vld [vmem:[%s375_s1 + $0x30] sm:$0xff]   ;;  %v261_v5 = vld [vmem:[%s375_s1 + $0x28] sm:$0xff]  }
   0x3   :  { %234 = vmatpush3.bf16.msra.mxu0 %v257_v1  ;;  %v262_v6 = vld [vmem:[%s375_s1 + $0x60] sm:$0xff]   ;;  %v264_v8 = vld [vmem:[%s375_s1 + $0x58] sm:$0xff]   ;;  %v266_v10 = vld [vmem:[%s375_s1 + $0x50] sm:$0xff]  }
   0x4   :  { %235 = vmatprep.subr.bf16.mxu0 %v258_v2  ;;  %v263_v7 = vld [vmem:[%s375_s1 + $0x20] sm:$0xff]   ;;  %v265_v9 = vld [vmem:[%s375_s1 + $0x18] sm:$0xff]  }
   0x5   :  { %v16_v11 = vld [vmem:[%s374_s0] sm:$0xff] }
   0x7   :  { %236 = vmatpush3.bf16.msra.mxu0 %v259_v3 }
   0x8   :  { %237 = vmatprep.subr.bf16.mxu0 %v260_v4 }
   0xb   :  { %238 = vmatpush3.bf16.msra.mxu0 %v261_v5 }
   0xc   :  { %239 = vmatprep.subr.bf16.mxu0 %v262_v6 }
   0xf   :  { %240 = vmatpush3.bf16.msra.mxu0 %v263_v7 }
  0x10   :  { %241 = vmatprep.subr.bf16.mxu0 %v264_v8 }
  0x11   :  { %8 = vsyncpa [#allocation3], 0  ;;  %v216_v12 = vcombine.high %v16_v11, %v16_v11  ;;  %v267_v13 = vld [vmem:[%s375_s1 + $0x10] sm:$0xff]   ;;  %v268_v14 = vld [vmem:[%s375_s1 + $0x48] sm:$0xff]   ;;  %v215_v18 = vcombine.low %v16_v11, %v16_v11  ;;  %s296_s20 = smov [#allocation2]  }
  0x12   :  { %v269_v15 = vld [vmem:[%s375_s1 + $0x8] sm:$0xff]   ;;  %v270_v16 = vld [vmem:[%s375_s1 + $0x40] sm:$0xff]   ;;  %s206_s21 = sshll.u32 %s296_s20, 4  ;;  %s207_s21 = int_to_ptr.vmem [resolvable:$true] %s206_s21 }
  0x13   :  { %242 = vmatpush3.bf16.msra.mxu0 %v265_v9  ;;  %191 = vmatprep.mubr.bf16.mxu0 %v216_v12  ;;  %v271_v17 = vld [vmem:[%s375_s1] sm:$0xff]   ;;  %s274_s22 = scalar_lea.vmem %s207_s21, 128  ;;  %p279_p1 = scmp.lt.s32.totalorder %s207_s21, %s207_s21 }
  0x14   :  { %243 = vmatprep.subr.bf16.mxu0 %v266_v10  ;;  %v214_v21 = vld [vmem:[%s376_s2] ss:$0 sm:$0xff]  ;;  %p275_p0 = scmp.ne.s32.totalorder %s207_s21, %s274_s22  ;;  %p280_p2 = scmp.lt.s32.totalorder %s274_s22, %s274_s22 }
  0x16   :  { %p281_p3 = por %p280_p2, %p279_p1 }
  0x17   :  { %244 = vmatpush3.bf16.msra.mxu0 %v267_v13 }
  0x18   :  { %245 = vmatprep.subr.bf16.mxu0 %v268_v14  ;;  %p282_p4 = pnand %p281_p3, %p275_p0 }
  0x1b   :  { %246 = vmatpush3.bf16.msra.mxu0 %v269_v15 }
  0x1c   :  { %247 = vmatprep.subr.bf16.mxu0 %v270_v16 }
  0x1f   :  { %248 = vmatpush3.bf16.msra.mxu0 %v271_v17 }
  0x22   :  { %192 = vmatmul.mubr.bf16.vlgmr.msra.gmra.mxu0 %v215_v18 }
  0xe2   :  { %v249_v19 = vpop.f32.mrf.mxu0 }
  0xe4   :  { %v250_v20 = vpop.f32.mrf.mxu0 }
  0xe5   :  { %v251_v22 = vadd.f32 %v250_v20, %v249_v19 }
  0xe6   :  { %v252_v23 = vpop.f32.mrf.mxu0 }
  0xe7   :  { %v194_v24 = vadd.f32 %v251_v22, %v214_v21 }
  0xe8   :  { %v253_v25 = vpop.f32.mrf.mxu0 }
  0xe9   :  { %199 = vst [vmem:[#allocation2] sm:$0xff] %v194_v24 }
  0xea   :  { %285 = shalt.err (!%p282_p4)
}
  0xeb   :  { %209 = dma.vmem_to_hbm [thread:$0]  %s207_s21, 128, %s377_s3, [#allocation3]  }
  0xec   :  { %294 = dma.done.wait [#allocation3], 128  }
  0xed   :  { %295 = vsyncadd [#allocation3], 4294967168 }
  0xee   :  { %213 = vsyncpa [#allocation3], 1 }

</bundles_post_ra>
